<compile_context>
chip_gen: v7x
topology: tpu7x:2x2x1
jax: 0.10.0
libtpu: 0.0.40
codegen_flags: <defaults>
</compile_context>

<pallas_src>
import functools
import math

import jax
import jax.numpy as jnp
from jax import lax
from jax.experimental import pallas as pl
from jax.experimental.pallas import tpu as pltpu


def _round_up(x, m):
    return ((x + m - 1) // m) * m


def _vmem_capacity_bytes():
    """Physical VMEM of the current device, with a conservative fallback."""
    try:
        info = pltpu.get_tpu_info()
        cap = getattr(info, "vmem_capacity_bytes", None)
        if cap:
            return int(cap)
    except Exception:
        pass
    return 64 << 20  # v7x per-TensorCore VMEM: the safe lower bound


def _pick_vocab_tile(V, tv_max):
    """Pick (tv, Vp): a multiple-of-128 vocab tile that divides the 128-padded
    vocab when possible (avoids a padded-output slice); fall back to padding
    only when the best divisor would be tiny."""
    v128 = _round_up(V, 128)
    if v128 <= tv_max:
        return v128, v128
    n = v128 // 128
    best = 128
    for d in range(1, int(math.isqrt(n)) + 1):
        if n % d == 0:
            for c in (d * 128, (n // d) * 128):
                if c <= tv_max:
                    best = max(best, c)
    if best >= 256:
        return best, v128
    # No reasonable divisor: use the full tile and let the wrapper slice the tail.
    return tv_max, _round_up(V, tv_max)


def _const_spec(block_shape, index_map):
    """BlockSpec for a grid-invariant input: request single buffering to halve
    its VMEM footprint; fall back to the default spec on older JAX."""
    try:
        return pl.BlockSpec(block_shape, index_map, pipeline_mode=pl.Buffered(1))
    except TypeError:
        return pl.BlockSpec(block_shape, index_map)


def _mlm_head_kernel(x_ref, w1_ref, bpack_ref, w2_ref, b2_ref, o_ref,
                     h_scratch, *, eps):
    """Fused dense -> GELU -> LayerNorm -> decoder (+bias).

    bpack_ref rows: 0 = dense bias, 1 = LN gamma, 2 = LN beta (all f32).
    The transform is computed once per row block (vocab step j == 0) and cached
    in h_scratch (bf16); the vocab axis must stay innermost + "arbitrary".
    """
    j = pl.program_id(1)

    @pl.when(j == 0)
    def _():
        # dense: x @ W1 + b1 — bf16 operands, f32 accumulation on the MXU
        h = jnp.dot(x_ref[...], w1_ref[...], preferred_element_type=jnp.float32)
        h = h + bpack_ref[0:1, :]
        # exact (erf-based) GELU, matching torch.nn.GELU() default
        h = 0.5 * h * (1.0 + lax.erf(h * jnp.float32(0.7071067811865476)))
        # LayerNorm over the hidden dim (f32 statistics)
        mu = jnp.mean(h, axis=-1, keepdims=True)
        var = jnp.mean((h - mu) * (h - mu), axis=-1, keepdims=True)
        h = (h - mu) * lax.rsqrt(var + jnp.float32(eps))
        h = h * bpack_ref[1:2, :] + bpack_ref[2:3, :]
        # cache as bf16: halves scratch VMEM and feeds the MXU natively
        h_scratch[...] = h.astype(h_scratch.dtype)

    # decoder: h @ W2_tile + bias_tile  (bf16 x bf16 -> f32 accumulate)
    out = jnp.dot(h_scratch[...], w2_ref[...],
                  preferred_element_type=jnp.float32) + b2_ref[...]
    o_ref[...] = out.astype(o_ref.dtype)


def prepare_params(params, *, tv=1024):
    """One-time host-side preparation (hoisted out of the per-call hot path):
    cast weights to bf16, pad the decoder weight/bias to the vocab tile, and
    pack bias/gamma/beta into a single (3, H) array."""
    H = params["dense_w"].shape[0]
    V = params["dec_w"].shape[1]
    tv_eff, Vp = _pick_vocab_tile(V, tv)

    w2 = params["dec_w"].astype(jnp.bfloat16)
    b2 = params["dec_b"].astype(jnp.float32)
    if Vp != V:
        w2 = jnp.pad(w2, ((0, 0), (0, Vp - V)))
        b2 = jnp.pad(b2, (0, Vp - V))

    bpack = jnp.stack(
        [params["dense_b"].astype(jnp.float32),
         params["ln_gamma"].astype(jnp.float32),
         params["ln_beta"].astype(jnp.float32)], axis=0)            # (3, H)

    return {
        "dense_w": params["dense_w"].astype(jnp.bfloat16),          # (H, H)  bf16
        "bpack": bpack,                                             # (3, H)  f32
        "dec_w": w2,                                                # (H, Vp) bf16
        "dec_b": b2.reshape(1, Vp),                                 # (1, Vp) f32
        "vocab_size": V,
        "tv": tv_eff,
    }


def head_for_mlm(hidden_states, prepared, *, eps=1e-5, tm=1024, out_dtype=None):
    """hidden_states: [B, S, H]. prepared: output of prepare_params().
    Returns logits [B, S, V] (dtype = out_dtype or hidden_states.dtype;
    pass jnp.bfloat16 to halve output writeback if downstream tolerates it)."""
    B, S, H = hidden_states.shape
    M = B * S
    w1 = prepared["dense_w"]
    bpack = prepared["bpack"]
    w2 = prepared["dec_w"]
    b2 = prepared["dec_b"]
    V = prepared["vocab_size"]
    tv_eff = prepared["tv"]
    Vp = w2.shape[1]
    out_dtype = jnp.dtype(out_dtype) if out_dtype is not None else jnp.dtype(hidden_states.dtype)

    # Row tile: as large as possible, but keep >=2 row blocks (v7x has 2 TCs)
    # whenever that doesn't shrink blocks below 256 rows.
    tm_eff = min(tm, _round_up(M, 8))
    if _round_up(M, tm_eff) // tm_eff < 2 and M >= 512:
        tm_eff = _round_up((M + 1) // 2, 8)
    Mp = _round_up(M, tm_eff)

    # Activations fed to the MXU in bf16 (f32 accumulate inside the kernel).
    x2d = hidden_states.reshape(M, H).astype(jnp.bfloat16)
    if Mp != M:
        x2d = jnp.pad(x2d, ((0, Mp - M), (0, 0)))

    grid = (Mp // tm_eff, Vp // tv_eff)
    out_isize = out_dtype.itemsize

    # VMEM budget estimate (accounting for single-buffered grid-invariants).
    est = (
        2 * tm_eff * H * 2            # x tile (bf16, double-buffered)
        + H * H * 2                   # dense weight (bf16, single-buffered)
        + 8 * H * 4                   # packed bias/gamma/beta (sublane-padded)
        + 2 * H * tv_eff * 2          # decoder weight tile (bf16)
        + 2 * 8 * tv_eff * 4          # decoder bias tile (sublane-padded)
        + 2 * tm_eff * tv_eff * out_isize   # output tile
        + tm_eff * H * 2              # h_scratch (bf16)
    )
    vmem_limit = int(min(max(est * 3 // 2, 16 << 20),
                         (_vmem_capacity_bytes() * 4) // 5))

    cost = pl.CostEstimate(
        flops=int(2 * M * H * (H + V)),
        transcendentals=int(M * H),
        bytes_accessed=int(Mp * H * 2 + H * H * 2
                           + (Mp // tm_eff) * H * Vp * 2
                           + Mp * Vp * out_isize),
    )

    out = pl.pallas_call(
        functools.partial(_mlm_head_kernel, eps=eps),
        out_shape=jax.ShapeDtypeStruct((Mp, Vp), out_dtype),
        grid_spec=pltpu.PrefetchScalarGridSpec(
            num_scalar_prefetch=0,
            grid=grid,
            in_specs=[
                pl.BlockSpec((tm_eff, H), lambda i, j: (i, 0)),      # x row block (bf16)
                _const_spec((H, H), lambda i, j: (0, 0)),            # dense weight (bf16)
                _const_spec((3, H), lambda i, j: (0, 0)),            # b1 / gamma / beta pack
                pl.BlockSpec((H, tv_eff), lambda i, j: (0, j)),      # decoder W tile (bf16)
                pl.BlockSpec((1, tv_eff), lambda i, j: (0, j)),      # decoder bias tile
            ],
            out_specs=pl.BlockSpec((tm_eff, tv_eff), lambda i, j: (i, j)),
            scratch_shapes=[pltpu.VMEM((tm_eff, H), jnp.bfloat16)],
        ),
        compiler_params=pltpu.CompilerParams(
            # NOTE: vocab axis must stay innermost + "arbitrary" (h_scratch reuse).
            dimension_semantics=("parallel", "arbitrary"),
            vmem_limit_bytes=vmem_limit,
        ),
        cost_estimate=cost,
    )(x2d, w1, bpack, w2, b2)

    if Mp != M or Vp != V:
        out = out[:M, :V]
    return out.reshape(B, S, V)


def init_params(key, hidden_size, vocab_size):
    """Deterministic synthetic parameters (shapes match the PyTorch module)."""
    k1, k2, k3 = jax.random.split(key, 3)
    bound = 1.0 / math.sqrt(hidden_size)
    # weights stored [in, out] (transposed vs. torch Linear [out, in])
    dense_w = jax.random.uniform(k1, (hidden_size, hidden_size),
                                 jnp.float32, -bound, bound)
    dense_b = jax.random.uniform(k2, (hidden_size,), jnp.float32, -bound, bound)
    dec_w = jax.random.uniform(k3, (hidden_size, vocab_size),
                               jnp.float32, -bound, bound)
    return {
        "dense_w": dense_w,
        "dense_b": dense_b,
        "ln_gamma": jnp.ones((hidden_size,), jnp.float32),   # nn.LayerNorm default
        "ln_beta": jnp.zeros((hidden_size,), jnp.float32),
        "dec_w": dec_w,
        "dec_b": jnp.zeros((vocab_size,), jnp.float32),      # self.bias = zeros
    }


def _reference(hidden_states, params, eps=1e-5):
    x = hidden_states
    h = x @ params["dense_w"] + params["dense_b"]
    h = 0.5 * h * (1.0 + lax.erf(h / jnp.sqrt(2.0)))
    mu = jnp.mean(h, axis=-1, keepdims=True)
    var = jnp.mean((h - mu) ** 2, axis=-1, keepdims=True)
    h = (h - mu) / jnp.sqrt(var + eps)
    h = h * params["ln_gamma"] + params["ln_beta"]
    return h @ params["dec_w"] + params["dec_b"]


if __name__ == "__main__":
    B, S, H, V = 2, 8, 32, 256        # small config.hidden_size / vocab_size
    EPS = 1e-5                        # config.layer_norm_eps

    key = jax.random.PRNGKey(0)
    kx, kp = jax.random.split(key)
    hidden_states = jax.random.normal(kx, (B, S, H), jnp.float32)
    params = init_params(kp, H, V)
    prepared = prepare_params(params)          # one-time host-side prep

    out = head_for_mlm(hidden_states, prepared, eps=EPS)
    out = jax.block_until_ready(out)

    ref = _reference(hidden_states, params, eps=EPS)
    assert out.shape == (B, S, V)
    # dense and decoder matmuls run with bf16 operands (f32 accumulate) -> loosened tol
    assert jnp.allclose(out, ref, atol=3e-2, rtol=3e-2), "mismatch vs reference"
    print("KERNEL_OK")
</pallas_src>

<mosaic_0001>
module attributes {stable_mosaic.version = 11 : i64} {
  func.func @_mlm_head_kernel(%arg0: i32, %arg1: i32, %arg2: memref<16x32xbf16, #tpu.memory_space<vmem>>, %arg3: memref<32x32xbf16, #tpu.memory_space<vmem>>, %arg4: memref<3x32xf32, #tpu.memory_space<vmem>>, %arg5: memref<32x256xbf16, #tpu.memory_space<vmem>>, %arg6: memref<1x256xf32, #tpu.memory_space<vmem>>, %arg7: memref<16x256xf32, #tpu.memory_space<vmem>>, %arg8: memref<16x32xbf16, #tpu.memory_space<vmem>>) attributes {dimension_semantics = [#tpu.dimension_semantics<parallel>, #tpu.dimension_semantics<arbitrary>], iteration_bounds = array<i64: 1, 1>, scalar_prefetch = 0 : i64, scratch_operands = 1 : i64, tpu.core_type = #tpu.core_type<tc>, window_params = [{transform_indices = @transform_0, window_bounds = array<i64: 16, 32>}, {pipeline_mode = #tpu.pipeline_mode<synchronous>, transform_indices = @transform_1, window_bounds = array<i64: 32, 32>}, {pipeline_mode = #tpu.pipeline_mode<synchronous>, transform_indices = @transform_2, window_bounds = array<i64: 3, 32>}, {transform_indices = @transform_3, window_bounds = array<i64: 32, 256>}, {transform_indices = @transform_4, window_bounds = array<i64: 1, 256>}, {transform_indices = @transform_5, window_bounds = array<i64: 16, 256>}]} {
    %c0_i32 = arith.constant 0 : i32
    %0 = arith.cmpi eq, %arg1, %c0_i32 : i32
    %1 = arith.extui %0 : i1 to i32
    %c0_i32_0 = arith.constant 0 : i32
    %2 = arith.cmpi ne, %1, %c0_i32_0 : i32
    scf.if %2 {
      %c0_8 = arith.constant 0 : index
      %c0_9 = arith.constant 0 : index
      %10 = vector.load %arg2[%c0_8, %c0_9] : memref<16x32xbf16, #tpu.memory_space<vmem>>, vector<16x32xbf16>
      %c0_10 = arith.constant 0 : index
      %c0_11 = arith.constant 0 : index
      %11 = vector.load %arg3[%c0_10, %c0_11] : memref<32x32xbf16, #tpu.memory_space<vmem>>, vector<32x32xbf16>
      %cst_12 = arith.constant dense<0.000000e+00> : vector<16x32xf32>
      %12 = tpu.matmul %10, %11, %cst_12 {dimension_numbers = #tpu.dot_dimension_numbers<[1], [0], [0], [1], [0, 0, 1, 1], [], []>} : vector<16x32xbf16>, vector<32x32xbf16>, vector<16x32xf32> -> vector<16x32xf32>
      %c0_13 = arith.constant 0 : index
      %c0_14 = arith.constant 0 : index
      %13 = vector.load %arg4[%c0_13, %c0_14] : memref<3x32xf32, #tpu.memory_space<vmem>>, vector<1x32xf32>
      %14 = vector.broadcast %13 : vector<1x32xf32> to vector<16x32xf32>
      %15 = arith.addf %12, %14 : vector<16x32xf32>
      %cst_15 = arith.constant 5.000000e-01 : f32
      %16 = vector.broadcast %cst_15 : f32 to vector<16x32xf32>
      %17 = arith.mulf %16, %15 : vector<16x32xf32>
      %cst_16 = arith.constant 0.707106769 : f32
      %18 = vector.broadcast %cst_16 : f32 to vector<16x32xf32>
      %19 = arith.mulf %15, %18 : vector<16x32xf32>
      %20 = math.erf %19 : vector<16x32xf32>
      %cst_17 = arith.constant 1.000000e+00 : f32
      %21 = vector.broadcast %cst_17 : f32 to vector<16x32xf32>
      %22 = arith.addf %21, %20 : vector<16x32xf32>
      %23 = arith.mulf %17, %22 : vector<16x32xf32>
      %cst_18 = arith.constant dense<0.000000e+00> : vector<16xf32>
      %24 = vector.multi_reduction <add>, %23, %cst_18 [1] : vector<16x32xf32> to vector<16xf32>
      %25 = vector.shape_cast %24 : vector<16xf32> to vector<16x1xf32>
      %cst_19 = arith.constant 3.200000e+01 : f32
      %26 = vector.broadcast %cst_19 : f32 to vector<16x1xf32>
      %27 = arith.divf %25, %26 : vector<16x1xf32>
      %28 = vector.broadcast %27 : vector<16x1xf32> to vector<16x32xf32>
      %29 = arith.subf %23, %28 : vector<16x32xf32>
      %30 = vector.broadcast %27 : vector<16x1xf32> to vector<16x32xf32>
      %31 = arith.subf %23, %30 : vector<16x32xf32>
      %32 = arith.mulf %29, %31 : vector<16x32xf32>
      %cst_20 = arith.constant dense<0.000000e+00> : vector<16xf32>
      %33 = vector.multi_reduction <add>, %32, %cst_20 [1] : vector<16x32xf32> to vector<16xf32>
      %34 = vector.shape_cast %33 : vector<16xf32> to vector<16x1xf32>
      %cst_21 = arith.constant 3.200000e+01 : f32
      %35 = vector.broadcast %cst_21 : f32 to vector<16x1xf32>
      %36 = arith.divf %34, %35 : vector<16x1xf32>
      %37 = vector.broadcast %27 : vector<16x1xf32> to vector<16x32xf32>
      %38 = arith.subf %23, %37 : vector<16x32xf32>
      %cst_22 = arith.constant 9.99999974E-6 : f32
      %39 = vector.broadcast %cst_22 : f32 to vector<16x1xf32>
      %40 = arith.addf %36, %39 : vector<16x1xf32>
      %41 = math.rsqrt %40 : vector<16x1xf32>
      %42 = vector.broadcast %41 : vector<16x1xf32> to vector<16x32xf32>
      %43 = arith.mulf %38, %42 : vector<16x32xf32>
      %c1 = arith.constant 1 : index
      %c0_23 = arith.constant 0 : index
      %44 = vector.load %arg4[%c1, %c0_23] : memref<3x32xf32, #tpu.memory_space<vmem>>, vector<1x32xf32>
      %45 = vector.broadcast %44 : vector<1x32xf32> to vector<16x32xf32>
      %46 = arith.mulf %43, %45 : vector<16x32xf32>
      %c2 = arith.constant 2 : index
      %c0_24 = arith.constant 0 : index
      %47 = vector.load %arg4[%c2, %c0_24] : memref<3x32xf32, #tpu.memory_space<vmem>>, vector<1x32xf32>
      %48 = vector.broadcast %47 : vector<1x32xf32> to vector<16x32xf32>
      %49 = arith.addf %46, %48 : vector<16x32xf32>
      %50 = arith.truncf %49 : vector<16x32xf32> to vector<16x32xbf16>
      %c0_25 = arith.constant 0 : index
      %c0_26 = arith.constant 0 : index
      %51 = vector.load %arg8[%c0_25, %c0_26] : memref<16x32xbf16, #tpu.memory_space<vmem>>, vector<16x32xbf16>
      tpu.vector_store %arg8[%c0_25, %c0_26], %50 {strides = array<i32>} : memref<16x32xbf16, #tpu.memory_space<vmem>>, vector<16x32xbf16>,
    } else {
    }
    %c0 = arith.constant 0 : index
    %c0_1 = arith.constant 0 : index
    %3 = vector.load %arg8[%c0, %c0_1] : memref<16x32xbf16, #tpu.memory_space<vmem>>, vector<16x32xbf16>
    %c0_2 = arith.constant 0 : index
    %c0_3 = arith.constant 0 : index
    %4 = vector.load %arg5[%c0_2, %c0_3] : memref<32x256xbf16, #tpu.memory_space<vmem>>, vector<32x256xbf16>
    %cst = arith.constant dense<0.000000e+00> : vector<16x256xf32>
    %5 = tpu.matmul %3, %4, %cst {dimension_numbers = #tpu.dot_dimension_numbers<[1], [0], [0], [1], [0, 0, 1, 1], [], []>} : vector<16x32xbf16>, vector<32x256xbf16>, vector<16x256xf32> -> vector<16x256xf32>
    %c0_4 = arith.constant 0 : index
    %c0_5 = arith.constant 0 : index
    %6 = vector.load %arg6[%c0_4, %c0_5] : memref<1x256xf32, #tpu.memory_space<vmem>>, vector<1x256xf32>
    %7 = vector.broadcast %6 : vector<1x256xf32> to vector<16x256xf32>
    %8 = arith.addf %5, %7 : vector<16x256xf32>
    %c0_6 = arith.constant 0 : index
    %c0_7 = arith.constant 0 : index
    %9 = vector.load %arg7[%c0_6, %c0_7] : memref<16x256xf32, #tpu.memory_space<vmem>>, vector<16x256xf32>
    tpu.vector_store %arg7[%c0_6, %c0_7], %8 {strides = array<i32>} : memref<16x256xf32, #tpu.memory_space<vmem>>, vector<16x256xf32>,
    return
  }
  func.func @transform_0(%arg0: i32, %arg1: i32) -> (i32, i32) {
    %c0_i32 = arith.constant 0 : i32
    %c0_i32_0 = arith.constant 0 : i32
    return %arg0, %c0_i32 : i32, i32
  }
  func.func @transform_1(%arg0: i32, %arg1: i32) -> (i32, i32) {
    %c0_i32 = arith.constant 0 : i32
    %c0_i32_0 = arith.constant 0 : i32
    %c0_i32_1 = arith.constant 0 : i32
    return %c0_i32, %c0_i32_0 : i32, i32
  }
  func.func @transform_2(%arg0: i32, %arg1: i32) -> (i32, i32) {
    %c0_i32 = arith.constant 0 : i32
    %c0_i32_0 = arith.constant 0 : i32
    %c0_i32_1 = arith.constant 0 : i32
    return %c0_i32, %c0_i32_0 : i32, i32
  }
  func.func @transform_3(%arg0: i32, %arg1: i32) -> (i32, i32) {
    %c0_i32 = arith.constant 0 : i32
    %c0_i32_0 = arith.constant 0 : i32
    return %c0_i32, %arg1 : i32, i32
  }
  func.func @transform_4(%arg0: i32, %arg1: i32) -> (i32, i32) {
    %c0_i32 = arith.constant 0 : i32
    %c0_i32_0 = arith.constant 0 : i32
    return %c0_i32, %arg1 : i32, i32
  }
  func.func @transform_5(%arg0: i32, %arg1: i32) -> (i32, i32) {
    %c0_i32 = arith.constant 0 : i32
    return %arg0, %arg1 : i32, i32
  }
}

</mosaic_0001>

<bundles_post_ra>
// kernel: tpu_custom_call.1
= control target key start
LH: loop header
LB: loop body
LE: loop exit
PB: predicated region body
PF: predicated region fallthrough
CT: control target
= control target key end

     0   :  { %10 = vsyncpa [#allocation4], 0  ;;  %s563_s0 = inlined_call_operand.hbm [shape: bf16[16,32], index: 0, kind: input, shape index: {}]   ;;  %s564_s1 = inlined_call_operand.hbm [shape: bf16[32,32], index: 1, kind: input, shape index: {}]   ;;  %s565_s2 = inlined_call_operand.vmem [shape: f32[3,32], index: 2, kind: input, shape index: {}]   ;;  %s566_s3 = inlined_call_operand.hbm [shape: bf16[32,256], index: 3, kind: input, shape index: {}]   ;;  %s567_s4 = inlined_call_operand.vmem [shape: f32[1,256], index: 4, kind: input, shape index: {}]   ;;  %s568_s5 = inlined_call_operand.hbm [shape: f32[16,256], index: 5, kind: output, shape index: {}]  }
   0x1   :  { %11 = vsyncpa [#allocation7], 0 }
   0x2   :  { %12 = vsyncpa [#allocation5], 0  ;;  %s446_s18 = smov [#allocation6]   ;;  %s447_s20 = smov [#allocation3]  }
   0x3   :  { %s30_s19 = sshll.u32 %s446_s18, 4  ;;  %s18_s21 = sshll.u32 %s447_s20, 4  ;;  %s31_s19 = int_to_ptr.vmem [resolvable:$true] %s30_s19  ;;  %s489_s21 = int_to_ptr.vmem [resolvable:$true] %s18_s21 }
   0x4   :  { %s352_s24 = scalar_lea.hbm %s564_s1, 256 }
   0x5   :  { %p353_p0 = scmp.ne.s32.totalorder %s564_s1, %s352_s24  ;;  %p356_p1 = scmp.lt.u32.totalorder %s352_s24, %s564_s1 }
   0x7   :  { %p358_p2 = pnand %p356_p1, %p353_p0 }
   0x9   :  { %361 = shalt.err (!%p358_p2)
}
   0xa   :  { %s362_s29 = scalar_lea.vmem %s31_s19, 256  ;;  %p367_p4 = scmp.lt.s32.totalorder %s31_s19, %s31_s19 }
   0xb   :  { %p363_p3 = scmp.ne.s32.totalorder %s31_s19, %s362_s29  ;;  %p368_p5 = scmp.lt.s32.totalorder %s362_s29, %s362_s29 }
   0xd   :  { %p369_p6 = por %p368_p5, %p367_p4 }
   0xf   :  { %p370_p7 = pnand %p369_p6, %p363_p3 }
  0x11   :  { %373 = shalt.err (!%p370_p7)
}
  0x12   :  { %s448_s30 = smov 64   ;;  %s449_s6 = smov 4  }
  0x13   :  { %36 = dma.hbm_to_vmem [thread:$0]  %s564_s1, 256, %s31_s19, [#allocation7], %s448_s30, %s448_s30, %s449_s6  }
  0x14   :  { %s374_s11 = scalar_lea.hbm %s563_s0, 128 }
  0x15   :  { %p375_p8 = scmp.ne.s32.totalorder %s563_s0, %s374_s11  ;;  %p378_p9 = scmp.lt.u32.totalorder %s374_s11, %s563_s0 }
  0x17   :  { %p380_p10 = pnand %p378_p9, %p375_p8 }
  0x19   :  { %383 = shalt.err (!%p380_p10)
}
  0x1a   :  { %s384_s16 = scalar_lea.vmem %s489_s21, 128  ;;  %p389_p12 = scmp.lt.s32.totalorder %s489_s21, %s489_s21 }
  0x1b   :  { %p385_p11 = scmp.ne.s32.totalorder %s489_s21, %s384_s16  ;;  %p390_p13 = scmp.lt.s32.totalorder %s384_s16, %s384_s16 }
  0x1d   :  { %p391_p0 = por %p390_p13, %p389_p12 }
  0x1f   :  { %p392_p1 = pnand %p391_p0, %p385_p11 }
  0x21   :  { %395 = shalt.err (!%p392_p1)
}
  0x22   :  { %24 = dma.hbm_to_vmem [thread:$0]  %s563_s0, 128, %s489_s21, [#allocation4], %s448_s30, %s448_s30, %s449_s6  }
  0x23   :  { %s450_s18 = smov [#allocation8]   ;;  %s396_s23 = scalar_lea.hbm %s566_s3, 512 }
  0x24   :  { %s44_s19 = sshll.u32 %s450_s18, 4  ;;  %p397_p2 = scmp.ne.s32.totalorder %s566_s3, %s396_s23  ;;  %s45_s19 = int_to_ptr.vmem [resolvable:$true] %s44_s19 }
  0x25   :  { %p400_p3 = scmp.lt.u32.totalorder %s396_s23, %s566_s3 }
  0x27   :  { %p402_p4 = pnand %p400_p3, %p397_p2 }
  0x29   :  { %405 = shalt.err (!%p402_p4)
}
  0x2a   :  { %s406_s28 = scalar_lea.vmem %s45_s19, 512  ;;  %p411_p6 = scmp.lt.s32.totalorder %s45_s19, %s45_s19 }
  0x2b   :  { %p407_p5 = scmp.ne.s32.totalorder %s45_s19, %s406_s28  ;;  %p412_p7 = scmp.lt.s32.totalorder %s406_s28, %s406_s28 }
  0x2d   :  { %p413_p8 = por %p412_p7, %p411_p6 }
  0x2f   :  { %p414_p9 = pnand %p413_p8, %p407_p5 }
  0x31   :  { %417 = shalt.err (!%p414_p9)
}
  0x32   :  { %s451_s0 = smov 128   ;;  %s452_s21 = smov 8  }
  0x33   :  { %50 = dma.hbm_to_vmem [thread:$0]  %s566_s3, 512, %s45_s19, [#allocation7], %s451_s0, %s451_s0, %s452_s21  }
  0x34   :  { %440 = dma.done.wait [#allocation4], 128  }
  0x35   :  { %441 = vsyncadd [#allocation4], 4294967168 }
  0x36   :  { %442 = dma.done.wait [#allocation7], 768  }
  0x37   :  { %443 = vsyncadd [#allocation7], 4294966528  ;;  %v453_v0 = vmov 0.0   ;;  %vm454_vm0 = vmmov 0   ;;  %v335_v1 = vld [vmem:[#allocation6] sm:$0xff]   ;;  %v336_v2 = vld [vmem:[#allocation6 + $0x8] sm:$0xff]   ;;  %v200_v56 = vlaneseq }
  0x38   :  { %314 = vmatprep.subr.bf16.mxu0 %v453_v0  ;;  %318 = vmatprep.mubr.msk.bf16.mxu0 %vm454_vm0, %v453_v0  ;;  %v337_v3 = vld [vmem:[#allocation3] sm:$0xff]   ;;  %vm95_vm1 = vcmask 261120   ;;  %v299_v4 = vld [vmem:[%s565_s2] ss:$0 sm:$0xff]  ;;  %v341_v35 = vld [vmem:[#allocation8 + $0x14] ss:$8 sps:$4 sm:$0xff]  }
  0x39   :  { %315 = vmatpush3.bf16.msra.mxu0 %v335_v1  ;;  %v338_v33 = vld [vmem:[#allocation8 + $0x4] ss:$8 sps:$4 sm:$0xff]   ;;  %v340_v34 = vld [vmem:[#allocation8] ss:$8 sps:$4 sm:$0xff]   ;;  %v343_v36 = vld [vmem:[#allocation8 + $0x10] ss:$8 sps:$4 sm:$0xff]  }
  0x3a   :  { %316 = vmatprep.subr.bf16.mxu0 %v453_v0  ;;  %234 = vmatprep.subr.bf16.mxu1 %v338_v33  ;;  %v455_v37 = vmov 0   ;;  %v304_v46 = vld [vmem:[%s565_s2 + $0x1] ss:$0 sm:$0xff]  ;;  %v305_v50 = vld [vmem:[%s565_s2 + $0x2] ss:$0 sm:$0xff]  ;;  %v201_v57 = vshrl.u32 %v200_v56, 7 }
  0x3b   :  { %235 = vmatpush1.bf16.msra.mxu1 %v340_v34  ;;  %266 = vmatprep.mubr.bf16.mxu1 %v455_v37  ;;  %v198_v59 = vld [vmem:[%s567_s4] sm:$0x3]  ;;  %s456_s2 = smov [#allocation9]  }
  0x3c   :  { %236 = vmatprep.subr.bf16.mxu1 %v341_v35  ;;  %v202_v58 = vsub.s32 0, %v201_v57  ;;  %v206_v60 = vsub.s32 1, %v201_v57  ;;  %s286_s13 = sshll.u32 %s456_s2, 4  ;;  %s287_s13 = int_to_ptr.vmem [resolvable:$true] %s286_s13 }
  0x3d   :  { %317 = vmatpush3.bf16.msra.mxu0 %v336_v2  ;;  %s418_s14 = scalar_lea.vmem %s287_s13, 512  ;;  %p423_p11 = scmp.lt.s32.totalorder %s287_s13, %s287_s13 }
  0x3e   :  { %v203_v61 = vrot.slane %v198_v59, %v202_v58  ;;  %v207_v62 = vrot.slane %v198_v59, %v206_v60  ;;  %p419_p10 = scmp.ne.s32.totalorder %s287_s13, %s418_s14  ;;  %p424_p12 = scmp.lt.s32.totalorder %s418_s14, %s418_s14 }
  0x3f   :  { %237 = vmatpush1.bf16.msra.mxu1 %v343_v36 }
  0x40   :  { %319 = vmatmul.mubr.msk.bf16.vlgmr.msra.gmra.mrb[0].mxu0 %vm95_vm1, %v337_v3  ;;  %p425_p13 = por %p424_p12, %p423_p11 }
  0x42   :  { %p426_p0 = pnand %p425_p13, %p419_p10 }
 0x113   :  { %v133_v5 = vpop.f32.mrb[0].mxu0 }
 0x114   :  { %v134_v6 = vadd.f32 %v299_v4, %v133_v5  ;;  %v320_v7 = vpop.f32.mrb[1].mxu0 }
 0x115   :  { %v136_v8 = vpop.f32.mrb[2].mxu0 }
 0x116   :  { %v142_v9 = vmul.f32 0.70710677, %v134_v6  ;;  %v137_v10 = vadd.f32 %v299_v4, %v136_v8  ;;  %v321_v11 = vpop.f32.mrb[3].mxu0  ;;  %v140_v14 = vmul.f32 0.5, %v134_v6 }
 0x118   :  { %344 = verf.f32 %v142_v9  ;;  %v143_v12 = vmul.f32 0.70710677, %v137_v10  ;;  %v141_v17 = vmul.f32 0.5, %v137_v10 }
 0x11a   :  { %346 = verf.f32 %v143_v12 }
 0x122   :  { %v345_v13 = vpop.eup %344 }
 0x123   :  { %v146_v15 = vadd.f32 1.0, %v345_v13 }
 0x124   :  { %v347_v16 = vpop.eup %346 }
 0x125   :  { %v148_v18 = vmul.f32 %v146_v15, %v140_v14  ;;  %v147_v19 = vadd.f32 1.0, %v347_v16 }
 0x127   :  { %v150_v20 = vsel %vm95_vm1, %v148_v18, 0.0  ;;  %v149_v21 = vmul.f32 %v147_v19, %v141_v17 }
 0x128   :  { %151 = vadd.xlane.f32.xlu0 %v150_v20 }
 0x129   :  { %v153_v22 = vsel %vm95_vm1, %v149_v21, 0.0 }
 0x12c   :  { %154 = vadd.xlane.f32.xlu0 %v153_v22 }
 0x1b5   :  { %v152_v23 = vpop.xlane.xlu0 %151 }
 0x1b6   :  { %v157_v24 = vmul.f32 0.03125, %v152_v23 }
 0x1b8   :  { %v159_v25 = vsub.f32 %v148_v18, %v157_v24 }
 0x1b9   :  { %v155_v26 = vpop.xlane.xlu0 %154 }
 0x1ba   :  { %v158_v27 = vmul.f32 0.03125, %v155_v26  ;;  %v161_v28 = vmul.f32 %v159_v25, %v159_v25 }
 0x1bc   :  { %v160_v29 = vsub.f32 %v149_v21, %v158_v27  ;;  %v163_v30 = vsel %vm95_vm1, %v161_v28, 0.0 }
 0x1bd   :  { %164 = vadd.xlane.f32.xlu1 %v163_v30 }
 0x1be   :  { %v162_v31 = vmul.f32 %v160_v29, %v160_v29 }
 0x1c0   :  { %v166_v32 = vsel %vm95_vm1, %v162_v31, 0.0 }
 0x1c1   :  { %167 = vadd.xlane.f32.xlu1 %v166_v32 }
 0x24a   :  { %v165_v38 = vpop.xlane.xlu1 %164 }
 0x24b   :  { %v169_v39 = vmul.f32 0.03125, %v165_v38 }
 0x24d   :  { %v171_v40 = vadd.f32 1e-05, %v169_v39 }
 0x24e   :  { %v168_v41 = vpop.xlane.xlu1 %167 }
 0x24f   :  { %348 = vrsqrt.f32 %v171_v40  ;;  %v170_v42 = vmul.f32 0.03125, %v168_v41 }
 0x251   :  { %v172_v43 = vadd.f32 1e-05, %v170_v42 }
 0x253   :  { %350 = vrsqrt.f32 %v172_v43 }
 0x259   :  { %v349_v44 = vpop.eup %348 }
 0x25a   :  { %v175_v45 = vmul.f32 %v349_v44, %v159_v25 }
 0x25c   :  { %v182_v48 = vmul.f32 %v304_v46, %v175_v45 }
 0x25d   :  { %v351_v47 = vpop.eup %350 }
 0x25e   :  { %v176_v49 = vmul.f32 %v351_v47, %v160_v29  ;;  %v189_v52 = vadd.f32 %v305_v50, %v182_v48 }
 0x260   :  { %v183_v51 = vmul.f32 %v304_v46, %v176_v49 }
 0x262   :  { %v190_v53 = vadd.f32 %v305_v50, %v183_v51 }
 0x264   :  { %v191_v54 = vpack.c.bf16 %v190_v53, %v189_v52 }
 0x266   :  { %192 = vst.msk [vmem:[#allocation2] sm:$0xff] %vm95_vm1, %v191_v54 }
 0x26d   :  { %v193_v55 = vld [vmem:[#allocation2] sm:$0xff] }
 0x26e   :  { %310 = vmatmul.mubr.msk.bf16.vlgmr.msra.gmra.mrb[0].mxu1 %vm95_vm1, %v193_v55 }
 0x341   :  { %v268_v63 = vpop.f32.mrb[0].mxu1 }
 0x342   :  { %v269_v0 = vadd.f32 %v268_v63, %v203_v61  ;;  %v270_v1 = vpop.f32.mrb[1].mxu1 }
 0x343   :  { %v271_v2 = vadd.f32 %v270_v1, %v207_v62  ;;  %v272_v3 = vpop.f32.mrb[2].mxu1 }
 0x344   :  { %277 = vst [vmem:[#allocation9] sm:$0xff] %v269_v0  ;;  %v273_v4 = vadd.f32 %v272_v3, %v203_v61  ;;  %v274_v5 = vpop.f32.mrb[3].mxu1 }
 0x345   :  { %278 = vst [vmem:[#allocation9 + $0x8] sm:$0xff] %v271_v2  ;;  %v275_v6 = vadd.f32 %v274_v5, %v207_v62 }
 0x346   :  { %279 = vst [vmem:[#allocation9 + $0x10] sm:$0xff] %v273_v4 }
 0x347   :  { %280 = vst [vmem:[#allocation9 + $0x18] sm:$0xff] %v275_v6 }
 0x348   :  { %429 = shalt.err (!%p426_p0)
}
 0x349   :  { %s430_s16 = scalar_lea.hbm %s568_s5, 512 }
 0x34a   :  { %p431_p1 = scmp.ne.s32.totalorder %s568_s5, %s430_s16  ;;  %p434_p2 = scmp.lt.u32.totalorder %s430_s16, %s568_s5 }
 0x34c   :  { %p436_p3 = pnand %p434_p2, %p431_p1 }
 0x34e   :  { %439 = shalt.err (!%p436_p3)
}
 0x34f   :  { %s457_s20 = smov 256   ;;  %s458_s22 = smov 16  }
 0x350   :  { %292 = dma.vmem_to_hbm [thread:$0]  %s287_s13, 512, %s568_s5, [#allocation5], %s457_s20, %s457_s20, %s458_s22  }
 0x351   :  { %444 = dma.done.wait [#allocation5], 512  }
 0x352   :  { %445 = vsyncadd [#allocation5], 4294966784 }
 0x353   :  { %296 = vsyncpa [#allocation4], 1 }
 0x354   :  { %297 = vsyncpa [#allocation7], 1 }
 0x355   :  { %298 = vsyncpa [#allocation5], 1 }

</bundles_post_ra>
